<compile_context>
chip_gen: v5e
topology: v5e:2x2
jax: 0.10.0
libtpu: 0.0.40
codegen_flags: <defaults>
</compile_context>

<pallas_src>
import math

import jax
import jax.numpy as jnp
from jax.experimental import pallas as pl
from jax.experimental.pallas import tpu as pltpu


def eca_kernel_size(channels: int, b: int = 1, gamma: int = 2) -> int:
    k = int(abs(math.log2(channels) / gamma + b / gamma))
    return k if k % 2 else k + 1


# ---------------------------------------------------------------------------
# VMEM budgeting (generation-aware).
# ---------------------------------------------------------------------------
def _vmem_budgets():
    """Returns (vmem_limit_bytes, per_block_budget_bytes).

    Fused-kernel footprint ~= 4x block (input + output, each double-buffered)
    plus a tiny (bt, C) f32 pooled temporary, so the block budget leaves
    generous headroom under the limit on every generation.
    """
    try:
        cap = int(pltpu.get_tpu_info().vmem_capacity_bytes)
    except Exception:              # not on TPU / older API -> conservative
        cap = 64 << 20
    if cap >= (100 << 20):         # v5e / v6e: 128 MiB physical VMEM
        return 96 << 20, 14 << 20
    return 52 << 20, 10 << 20      # v7x: 64 MiB physical VMEM


def _choose_batch_tile(B: int, per_image_bytes: int, block_budget: int) -> int:
    bt = max(1, block_budget // max(per_image_bytes, 1))
    bt = min(bt, B)
    if B >= 2:
        # Keep the grid >= 2 so the parallel batch axis can be split across
        # v7x's two TensorCores (near-zero cost on single-TC v5e/v6e).
        bt = min(bt, (B + 1) // 2)
    return int(bt)


def _choose_channel_tile(C: int, per_channel_bytes: int, block_budget: int) -> int:
    ct = block_budget // max(per_channel_bytes, 1)
    ct = max(8, (ct // 8) * 8)     # keep the sublane dim 8-aligned
    return C if ct >= C else int(ct)


# ---------------------------------------------------------------------------
# Kernels.
# ---------------------------------------------------------------------------
def _eca_fused_kernel(w_ref, x_ref, o_ref):
    """Single-pass ECA over a (bt, C, H*W) lane-dense tile.

    w_ref : (k,) f32 SMEM -- conv taps with the 1/(H*W) pooling scale folded in.
    x_ref : (bt, C, HW) VMEM tile, native dtype.
    o_ref : (bt, C, HW) VMEM tile, native dtype.
    """
    x = x_ref[...]                               # keep native dtype on hot path
    bt, C, _ = x.shape
    k = w_ref.shape[0]
    pad = (k - 1) // 2

    # Global average pool: f32-accumulated sum (mean's 1/(H*W) is in w_ref).
    pooled = jnp.sum(x, axis=-1, dtype=jnp.float32)                 # (bt, C)

    # k-tap 1-D conv over channels (zero padded) as k shifted-and-scaled adds.
    if pad > 0:
        z = jnp.zeros((bt, pad), jnp.float32)
        padded = jnp.concatenate([z, pooled, z], axis=-1)           # (bt, C+2p)
    else:
        padded = pooled
    conv = padded[:, 0:C] * w_ref[0]
    for j in range(1, k):                                           # k is 3/5
        conv = conv + padded[:, j:j + C] * w_ref[j]

    gate = jax.nn.sigmoid(conv).astype(x.dtype)                     # (bt, C)
    o_ref[...] = (x * gate[:, :, None]).astype(o_ref.dtype)


def _pool_kernel(x_ref, o_ref):
    # x: (1, ct, HW) -> o: (1, ct, 1) f32 spatial sum (f32 accumulation).
    o_ref[...] = jnp.sum(x_ref[...], axis=-1, keepdims=True, dtype=jnp.float32)


def _scale_kernel(g_ref, x_ref, o_ref):
    # g: (1, ct, 1) gate (native dtype), x/o: (1, ct, HW).
    o_ref[...] = (x_ref[...] * g_ref[...]).astype(o_ref.dtype)


# ---------------------------------------------------------------------------
# Wrapper.
# ---------------------------------------------------------------------------
def eca_forward(x: jax.Array, conv_weight: jax.Array, *,
                block_budget_bytes: int | None = None) -> jax.Array:
    B, C, H, W = x.shape
    HW = H * W
    k = conv_weight.shape[0]
    pad = (k - 1) // 2
    itemsize = jnp.dtype(x.dtype).itemsize

    vmem_limit, block_budget = _vmem_budgets()
    if block_budget_bytes is not None:           # test hook / manual override
        block_budget = block_budget_bytes

    # Lane-dense layout: flatten spatial dims so the last (lane) axis is H*W.
    # NOTE: for the 7x7 / 14x14 ECA stages HW is not a multiple of 128 which
    # costs masked partial stores; a channels-last (B, HW, C) layout would fix
    # that, but we do NOT add a wrapper-side HBM transpose just for this.
    x3 = x.reshape(B, C, HW)
    # Fold the pooling 1/(H*W) into the conv taps (sum instead of mean in-kernel).
    w_scaled = conv_weight.astype(jnp.float32) / float(HW)

    per_image_bytes = C * HW * itemsize

    if per_image_bytes <= block_budget:
        # -------------------- fused single-pass path --------------------
        bt = _choose_batch_tile(B, per_image_bytes, block_budget)
        grid = (pl.cdiv(B, bt),)                 # ragged last block is masked
        out3 = pl.pallas_call(
            _eca_fused_kernel,
            out_shape=jax.ShapeDtypeStruct((B, C, HW), x.dtype),
            grid=grid,
            in_specs=[
                pl.BlockSpec(memory_space=pltpu.MemorySpace.SMEM),   # taps
                pl.BlockSpec((bt, C, HW), lambda i: (i, 0, 0)),
            ],
            out_specs=pl.BlockSpec((bt, C, HW), lambda i: (i, 0, 0)),
            compiler_params=pltpu.CompilerParams(
                dimension_semantics=("parallel",),
                vmem_limit_bytes=vmem_limit,
            ),
        )(w_scaled, x3)
        return out3.reshape(B, C, H, W)

    # ---------- two-pass fallback for very large single images ----------
    # A single (C, HW) image does not fit the block budget (e.g. C=2048,
    # HW=3136 f32 is ~25.7 MiB; x4 double-buffered in+out would exceed v7x's
    # 64 MiB physical VMEM).  Pass 1 pools channel tiles; the tiny (B, C)
    # conv+sigmoid gate runs as plain JAX; pass 2 streams x again to multiply.
    # TODO(synk): a single-pass channel-halo variant (manual DMA of the
    # (k-1)//2 halo channels) would cut HBM traffic from 3x to 2x.
    ct = _choose_channel_tile(C, HW * itemsize, block_budget)
    grid2 = (B, pl.cdiv(C, ct))

    pooled3 = pl.pallas_call(
        _pool_kernel,
        out_shape=jax.ShapeDtypeStruct((B, C, 1), jnp.float32),
        grid=grid2,
        in_specs=[pl.BlockSpec((1, ct, HW), lambda i, j: (i, j, 0))],
        out_specs=pl.BlockSpec((1, ct, 1), lambda i, j: (i, j, 0)),
        compiler_params=pltpu.CompilerParams(
            dimension_semantics=("parallel", "parallel"),
            vmem_limit_bytes=vmem_limit,
        ),
    )(x3)

    pooled = pooled3[:, :, 0]                                    # (B, C) f32 sums
    padded = jnp.pad(pooled, ((0, 0), (pad, pad)))               # zero-padded conv
    conv = sum(w_scaled[j] * padded[:, j:j + C] for j in range(k))
    gate = jax.nn.sigmoid(conv).astype(x.dtype)[:, :, None]      # (B, C, 1)

    out3 = pl.pallas_call(
        _scale_kernel,
        out_shape=jax.ShapeDtypeStruct((B, C, HW), x.dtype),
        grid=grid2,
        in_specs=[
            pl.BlockSpec((1, ct, 1), lambda i, j: (i, j, 0)),
            pl.BlockSpec((1, ct, HW), lambda i, j: (i, j, 0)),
        ],
        out_specs=pl.BlockSpec((1, ct, HW), lambda i, j: (i, j, 0)),
        compiler_params=pltpu.CompilerParams(
            dimension_semantics=("parallel", "parallel"),
            vmem_limit_bytes=vmem_limit,
        ),
    )(gate, x3)
    return out3.reshape(B, C, H, W)


def eca_reference(x: jax.Array, conv_weight: jax.Array) -> jax.Array:
    """Pure-JAX reference matching the PyTorch forward."""
    B, C, H, W = x.shape
    k = conv_weight.shape[0]
    pad = (k - 1) // 2
    pooled = jnp.mean(x, axis=(2, 3))                      # (B, C)
    padded = jnp.pad(pooled, ((0, 0), (pad, pad)))         # zero-padded conv
    conv = sum(conv_weight[j] * padded[:, j:j + C] for j in range(k))
    y = jax.nn.sigmoid(conv)
    return x * y[:, :, None, None]


if __name__ == "__main__":
    B, C, H, W = 2, 8, 16, 16           # channels=8 -> eca_kernel_size() == 3
    k = eca_kernel_size(C)

    key = jax.random.PRNGKey(0)
    kx, kw = jax.random.split(key)
    x = jax.random.normal(kx, (B, C, H, W), dtype=jnp.float32)
    # Deterministic synthetic weight for nn.Conv1d(1, 1, k, bias=False) -> shape (k,)
    conv_weight = jax.random.normal(kw, (k,), dtype=jnp.float32) * 0.5

    ref = eca_reference(x, conv_weight)

    # Fused single-pass path (the common case).
    out = jax.block_until_ready(eca_forward(x, conv_weight))
    assert out.shape == x.shape and out.dtype == x.dtype
    assert jnp.allclose(out, ref, atol=1e-5, rtol=1e-5), "fused path mismatch"

    # Exercise the two-pass channel-tiled fallback (large-image path) on the
    # same small problem by shrinking the block budget.
    out2 = jax.block_until_ready(
        eca_forward(x, conv_weight, block_budget_bytes=1024))
    assert jnp.allclose(out2, ref, atol=1e-5, rtol=1e-5), "fallback path mismatch"

    print("KERNEL_OK")
</pallas_src>

<mosaic_0001>
module attributes {stable_mosaic.version = 11 : i64} {
  func.func @_eca_fused_kernel(%arg0: i32, %arg1: memref<3xf32, #tpu.memory_space<smem>>, %arg2: memref<1x8x256xf32, #tpu.memory_space<vmem>>, %arg3: memref<1x8x256xf32, #tpu.memory_space<vmem>>) attributes {dimension_semantics = [#tpu.dimension_semantics<parallel>], iteration_bounds = array<i64: 2>, scalar_prefetch = 0 : i64, scratch_operands = 0 : i64, tpu.core_type = #tpu.core_type<tc>, window_params = [{transform_indices = @transform_0, window_bounds = array<i64: 3>}, {transform_indices = @transform_1, window_bounds = array<i64: 1, 8, 256>}, {transform_indices = @transform_2, window_bounds = array<i64: 1, 8, 256>}]} {
    %c0 = arith.constant 0 : index
    %c0_0 = arith.constant 0 : index
    %c0_1 = arith.constant 0 : index
    %0 = vector.load %arg2[%c0, %c0_0, %c0_1] : memref<1x8x256xf32, #tpu.memory_space<vmem>>, vector<1x8x256xf32>
    %cst = arith.constant dense<0.000000e+00> : vector<1x8xf32>
    %1 = vector.multi_reduction <add>, %0, %cst [2] : vector<1x8x256xf32> to vector<1x8xf32>
    %cst_2 = arith.constant 0.000000e+00 : f32
    %2 = vector.broadcast %cst_2 : f32 to vector<1x1xf32>
    %3 = tpu.concatenate %2, %1, %2 in 1 : vector<1x1xf32>, vector<1x8xf32>, vector<1x1xf32> -> vector<1x10xf32>
    %4 = vector.extract_strided_slice %3 {offsets = [0, 0], sizes = [1, 8], strides = [1, 1]} : vector<1x10xf32> to vector<1x8xf32>
    %c0_3 = arith.constant 0 : index
    %5 = memref.load %arg1[%c0_3] : memref<3xf32, #tpu.memory_space<smem>>
    %6 = vector.broadcast %5 : f32 to vector<1x8xf32>
    %7 = arith.mulf %4, %6 : vector<1x8xf32>
    %8 = vector.extract_strided_slice %3 {offsets = [0, 1], sizes = [1, 8], strides = [1, 1]} : vector<1x10xf32> to vector<1x8xf32>
    %c1 = arith.constant 1 : index
    %9 = memref.load %arg1[%c1] : memref<3xf32, #tpu.memory_space<smem>>
    %10 = vector.broadcast %9 : f32 to vector<1x8xf32>
    %11 = arith.mulf %8, %10 : vector<1x8xf32>
    %12 = arith.addf %7, %11 : vector<1x8xf32>
    %13 = vector.extract_strided_slice %3 {offsets = [0, 2], sizes = [1, 8], strides = [1, 1]} : vector<1x10xf32> to vector<1x8xf32>
    %c2 = arith.constant 2 : index
    %14 = memref.load %arg1[%c2] : memref<3xf32, #tpu.memory_space<smem>>
    %15 = vector.broadcast %14 : f32 to vector<1x8xf32>
    %16 = arith.mulf %13, %15 : vector<1x8xf32>
    %17 = arith.addf %12, %16 : vector<1x8xf32>
    %18 = arith.negf %17 : vector<1x8xf32>
    %19 = math.exp %18 : vector<1x8xf32>
    %cst_4 = arith.constant 1.000000e+00 : f32
    %20 = vector.broadcast %cst_4 : f32 to vector<1x8xf32>
    %21 = arith.addf %20, %19 : vector<1x8xf32>
    %22 = arith.divf %20, %21 : vector<1x8xf32>
    %23 = vector.shape_cast %22 : vector<1x8xf32> to vector<1x8x1xf32>
    %24 = vector.broadcast %23 : vector<1x8x1xf32> to vector<1x8x256xf32>
    %25 = arith.mulf %0, %24 : vector<1x8x256xf32>
    %c0_5 = arith.constant 0 : index
    %c0_6 = arith.constant 0 : index
    %c0_7 = arith.constant 0 : index
    %26 = vector.load %arg3[%c0_5, %c0_6, %c0_7] : memref<1x8x256xf32, #tpu.memory_space<vmem>>, vector<1x8x256xf32>
    tpu.vector_store %arg3[%c0_5, %c0_6, %c0_7], %25 {strides = array<i32>} : memref<1x8x256xf32, #tpu.memory_space<vmem>>, vector<1x8x256xf32>,
    return
  }
  func.func @transform_0(%arg0: i32) -> i32 {
    %c0_i32 = arith.constant 0 : i32
    %c0_i32_0 = arith.constant 0 : i32
    return %c0_i32 : i32
  }
  func.func @transform_1(%arg0: i32) -> (i32, i32, i32) {
    %c0_i32 = arith.constant 0 : i32
    %c0_i32_0 = arith.constant 0 : i32
    %c0_i32_1 = arith.constant 0 : i32
    return %arg0, %c0_i32, %c0_i32_0 : i32, i32, i32
  }
  func.func @transform_2(%arg0: i32) -> (i32, i32, i32) {
    %c0_i32 = arith.constant 0 : i32
    %c0_i32_0 = arith.constant 0 : i32
    %c0_i32_1 = arith.constant 0 : i32
    return %arg0, %c0_i32, %c0_i32_0 : i32, i32, i32
  }
}

</mosaic_0001>

<bundles_post_ra>
// kernel: tpu_custom_call.1
= control target key start
LH: loop header
LB: loop body
LE: loop exit
PB: predicated region body
PF: predicated region fallthrough
CT: control target
= control target key end

     0   :  { %7 = vsyncpa [#allocation5], 0  ;;  %s702_s0 = inlined_call_operand.hbm [shape: f32[3], index: 0, kind: input, shape index: {}]   ;;  %s703_s1 = inlined_call_operand.hbm [shape: f32[2,8,256], index: 1, kind: input, shape index: {}]   ;;  %s704_s2 = inlined_call_operand.hbm [shape: f32[2,8,256], index: 2, kind: output, shape index: {}]  }
   0x1   :  { %8 = vsyncpa [#allocation3], 0 }
   0x2   :  { %10 = vsyncpa [#allocation3 + $0x1], 0 }
   0x3   :  { %11 = vsyncpa [#allocation4], 0 }
   0x4   :  { %13 = vsyncpa [#allocation4 + $0x1], 0  ;;  %s560_s9 = smov 0   ;;  %s562_s10 = smov 0  }
   0x5   :  { %s564_s11 = smov 0   ;;  %s566_s12 = smov 0  }
   0x6 LB: > { %s581_s13 = sadd.s32 4294967295, %s540_s12   ;;  %s339_s14 = sadd.s32 4294967294, %s540_s12   ;;  %s540_s12 = sphi %s566_s12, %s714_s12   ;;  %s536_s11 = sphi %s564_s11, %s713_s11   ;;  %s532_s10 = sphi %s562_s10, %s712_s10   ;;  %s528_s9 = sphi %s560_s9, %s711_s9  }
   0x7   : > { %p60_p0 = scmp.ne.s32.totalorder %s532_s10, %s528_s9  ;;  %p61_p1 = scmp.eq.s32.totalorder %s581_s13, 0 }
   0x8   : > { %p84_p2 = scmp.eq.s32.totalorder %s581_s13, 1  ;;  %p90_p3 = scmp.eq.s32.totalorder %s339_s14, 1 }
   0x9   : > { %p590_p4 = por %p61_p1, %p60_p0  ;;  %p340_p5 = scmp.ge.s32.totalorder %s540_s12, 1 }
   0xa   : > { %p595_p6 = por %p90_p3, %p60_p0  ;;  %p97_p7 = scmp.lt.s32.totalorder %s540_s12, 3 }
   0xb   : > { %s109_s19 = sshll.u32 %s702_s0, 4  ;;  %s611_s21 = sadd.s32 1, %s540_s12   ;;  %s110_s19 = int_to_ptr.hbm [resolvable:$true] %s109_s19 }
   0xc   : > { %p603_p8 = pnand %p340_p5, %p97_p7  ;;  %s44_s22 = ssub.s32 %s540_s12, %s611_s21 }
   0xd   : > { %p45_p12 = scmp.eq.s32.totalorder %s44_s22, 0  ;;  %s47_s23 = sadd.s32 1, %s536_s11 }
   0xe   : > { %p368_p10 = pneg %p603_p8  ;;  %p54_p13 = scmp.ne.s32.totalorder %s536_s11, %s532_s10 }
   0xf   : > { %s542_s24 = smov [#allocation2]   ;;  %p55_p0 = scmp.eq.s32.totalorder %s540_s12, 0 }
  0x10   : > { %p369_p11 = pnand %p368_p10, %p61_p1  ;;  %p626_p3 = por %p84_p2, %p54_p13 }
  0x11   : > { %s621_s25 = scalar_select %p45_p12, %s536_s11, %s47_s23  }
  0x12   : > { %371 = dma.hbm_to_smem (!%p369_p11), %s110_s19, 16, %s542_s24, [#allocation5]  }
  0x13   : > { %s120_s27 = sand.u32 1, %s536_s11   ;;  %p56_p5 = por %p55_p0, %p54_p13 }
  0x14   : > { %p381_p7 = scmp.lt.s32.totalorder %s540_s12, 2  ;;  %s343_s28 = sshll.u32 %s120_s27, 4 }
  0x15   : > { %s358_s29 = sshll.u32 %s540_s12, 4  ;;  %s124_s6 = scalar_lea.vmem [#allocation6], %s343_s28 }
  0x16   : > { %s129_s4 = scalar_lea.hbm %s703_s1, %s358_s29  ;;  %s133_s7 = sshll.u32 %s124_s6, 4  ;;  %s134_s7 = int_to_ptr.vmem [resolvable:$true] %s133_s7 }
  0x17   : > { %s131_s5 = sshll.u32 %s129_s4, 4  ;;  %p636_p10 = pnand %p381_p7, %p56_p5  ;;  %s132_s5 = int_to_ptr.hbm [resolvable:$true] %s131_s5 }
  0x18   : > { %s121_s14 = scalar_lea.sflag [#allocation3], %s120_s27  ;;  %s440_s17 = sshra.s32 %s132_s5, 4  ;;  %s441_s17 = int_to_ptr.hbm [resolvable:$true] %s440_s17 }
  0x19   : > { %s442_s18 = scalar_lea.hbm %s441_s17, 16  ;;  %p444_p11 = pneg %p636_p10 }
  0x1a   : > { %p443_p2 = scmp.ne.s32.totalorder %s441_s17, %s442_s18  ;;  %s447_s23 = scalar_lea.hbm %s703_s1, 32 }
  0x1b   : > { %p448_p0 = scmp.lt.s32.totalorder %s441_s17, %s703_s1  ;;  %p449_p5 = scmp.lt.s32.totalorder %s447_s23, %s442_s18 }
  0x1c   : > { %p445_p12 = pnand %p444_p11, %p443_p2 }
  0x1d   : > { %p450_p7 = por %p449_p5, %p448_p0 }
  0x1e   : > { %p446_p13 = pneg %p445_p12 }
  0x20   : > { %p451_p9 = pnand %p450_p7, %p446_p13 }
  0x22   : > { %454 = shalt.err (!%p451_p9)
}
  0x23   : > { %375 = dma.hbm_to_vmem [thread:$0]  (!%p636_p10), %s132_s5, 256, %s134_s7, %s121_s14  }
  0x24   : > { %142 = sbr.rel (%p603_p8) target bundleno = 443 (0x1bb), region = 28 }
  0x29   : > { %515 = dma.done.wait (%p61_p1), [#allocation5], 16  }
  0x2a   : > { %517 = vsyncadd (%p61_p1), [#allocation5], 4294967280  ;;  %s657_s27 = sand.u32 1, %s532_s10  }
  0x2b   : > { %s348_s29 = sshll.u32 %s657_s27, 4  ;;  %s150_s30 = scalar_lea.sflag [#allocation3], %s657_s27 }
  0x2c   : > { %s153_s3 = scalar_lea.vmem [#allocation6], %s348_s29 }
  0x2d   : > { %519 = dma.done.wait (%p590_p4), %s150_s30, 256  }
  0x2e   : > { %521 = vsyncadd (%p590_p4), %s150_s30, 4294967040 }
  0x2f   : > { %159 = sfence }
  0x30   : > { %v176_v0 = vld [vmem:[%s153_s3] sm:$0xff]  ;;  %v177_v1 = vld [vmem:[%s153_s3 + $0x8] sm:$0xff]  ;;  %v182_v3 = vlaneseq  ;;  %s351_s20 = sld [smem:[#allocation2 + $0x2]]  ;;  %vm187_vm0 = vcmask 7168   ;;  %vm189_vm1 = vcmask 72704   ;;  %s543_s15 = smov 126  }
  0x31   : > { %v178_v2 = vadd.f32 %v177_v1, %v176_v0  ;;  %s350_s4 = sld [smem:[#allocation2 + $0x1]]  ;;  %s544_s5 = smov 127  }
  0x32   : > { %v183_v4 = vand.u32 127, %v182_v3  ;;  %v231_v14 = vshrl.u32 %v182_v3, 7  ;;  %s191_s6 = sld [smem:[#allocation2]]  ;;  %s359_s7 = sshll.u32 %s581_s13, 4 }
  0x33   : > { %179 = vadd.xlane.f32.xlu0 %v178_v2  ;;  %s252_s17 = scalar_lea.hbm %s704_s2, %s359_s7  ;;  %s175_s18 = scalar_lea.vmem [#allocation7], %s348_s29 }
  0x34   : > { %v184_v5 = vadd.s32 4294967295, %v183_v4  ;;  %419 = vset.pattern.permute.xlu1 %v231_v14  ;;  %420 = vset.pattern.permute.xlu0 %v231_v14  ;;  %s254_s19 = sshll.u32 %s175_s18, 4  ;;  %s256_s22 = sshll.u32 %s252_s17, 4  ;;  %s255_s19 = int_to_ptr.vmem [resolvable:$true] %s254_s19  ;;  %s257_s22 = int_to_ptr.hbm [resolvable:$true] %s256_s22 }
  0x35   : > { %s241_s23 = scalar_lea.sflag [#allocation4], %s657_s27  ;;  %s484_s24 = sshra.s32 %s257_s22, 4  ;;  %s485_s24 = int_to_ptr.hbm [resolvable:$true] %s484_s24 }
  0x36   : > { %v203_v8 = vstv %s351_s20  ;;  %s486_s13 = scalar_lea.hbm %s485_s24, 16  ;;  %s490_s29 = scalar_lea.hbm %s704_s2, 32 }
  0x37   : > { %v195_v9 = vstv %s350_s4  ;;  %p487_p1 = scmp.ne.s32.totalorder %s485_s24, %s486_s13  ;;  %p491_p9 = scmp.lt.s32.totalorder %s485_s24, %s704_s2 }
  0x38   : > { %v192_v15 = vstv %s191_s6  ;;  %p492_p10 = scmp.lt.s32.totalorder %s490_s29, %s486_s13 }
  0x39   : > { %p488_p4 = pnand %p487_p1, %p626_p3 }
  0x3a   : > { %p493_p2 = por %p492_p10, %p491_p9 }
  0x3b   : > { %p489_p8 = pneg %p488_p4 }
  0x3d   : > { %p494_p11 = pnand %p493_p2, %p489_p8 }
  0xa6   : > { %v180_v6 = vpop.xlane.xlu0 %179 }
  0xa7   : > { %v185_v7 = vperm.slane %v180_v6, %v184_v5 }
  0xa9   : > { %v188_v10 = vsel %vm187_vm0, 0.0, %v185_v7 }
  0xaa   : > { %v190_v11 = vsel %vm189_vm1, %v188_v10, 0.0 }
  0xab   : > { %v204_v12 = vmul.f32 %v203_v8, %v190_v11  ;;  %v196_v13 = vmul.f32 %v195_v9, %v190_v11  ;;  %v193_v16 = vmul.f32 %v192_v15, %v190_v11 }
  0xad   : > { %206 = vrot.lane.b32.xlu1 %v204_v12, %s543_s15  ;;  %198 = vrot.lane.b32.xlu0 %v196_v13, %s544_s5 }
 0x11f   : > { %v199_v17 = vpop.permute.xlu0 %198  ;;  %v207_v19 = vpop.permute.xlu1 %206 }
 0x120   : > { %v201_v18 = vadd.f32 %v199_v17, %v193_v16 }
 0x122   : > { %v209_v20 = vadd.f32 %v207_v19, %v201_v18 }
 0x124   : > { %v352_v21 = vmul.f32 -1.442695, %v209_v20 }
 0x126   : > { %421 = vpow2.f32 %v352_v21 }
 0x12c   : > { %v422_v22 = vpop.eup %421 }
 0x12d   : > { %v213_v23 = vadd.f32 1.0, %v422_v22 }
 0x12f   : > { %423 = vrcp.f32 %v213_v23  ;;  %v225_v27 = vand.u32 2147483648, %v213_v23  ;;  %v223_v29 = vand.u32 2147483647, %v213_v23  ;;  %vm219_vm3 = vweird.f32 %v213_v23 }
 0x131   : > { %v226_v31 = vor.u32 1.1754944e-38, %v225_v27  ;;  %vm224_vm5 = vcmp.eq.f32.partialorder %v223_v29, 8.507059e+37 }
 0x135   : > { %v424_v24 = vpop.eup %423 }
 0x136   : > { %v215_v25 = vmul.f32 %v424_v24, %v213_v23  ;;  %vm220_vm2 = vweird.f32 %v424_v24 }
 0x137   : > { %vm221_vm4 = vmor %vm219_vm3, %vm220_vm2 }
 0x138   : > { %v216_v26 = vsub.f32 1.0, %v215_v25 }
 0x13a   : > { %v217_v28 = vmul.f32 %v424_v24, %v216_v26 }
 0x13c   : > { %v218_v30 = vadd.f32 %v424_v24, %v217_v28 }
 0x13e   : > { %v222_v32 = vsel %vm221_vm4, %v424_v24, %v218_v30 }
 0x13f   : > { %v227_v33 = vsel %vm224_vm5, %v226_v31, %v222_v32 }
 0x140   : > { %v229_v34 = vperm.slane %v227_v33, 0 }
 0x142   : > { %234 = vperm.xlu1 %419, %v229_v34  }
 0x1b4   : > { %v235_v35 = vpop.permute.xlu1 %234 }
 0x1b5   : > { %v236_v36 = vmul.f32 %v235_v35, %v176_v0  ;;  %v237_v37 = vmul.f32 %v235_v35, %v177_v1 }
 0x1b7   : > { %238 = vst [vmem:[%s175_s18] sm:$0xff] %v236_v36 }
 0x1b8   : > { %239 = vst [vmem:[%s175_s18 + $0x8] sm:$0xff] %v237_v37 }
 0x1b9   : > { %497 = shalt.err (!%p494_p11)
}
 0x1ba   : > { %366 = dma.vmem_to_hbm [thread:$0]  (%p626_p3), %s255_s19, 256, %s257_s22, %s241_s23  }
 0x1bb PF: > { %s268_s27 = sand.u32 1, %s528_s9   ;;  %p710_p12 = scmp.ge.s32.totalorder %s540_s12, 2 }
 0x1bc   : > { %s269_s4 = scalar_lea.sflag [#allocation4], %s268_s27 }
 0x1bd   : > { %p377_p13 = pnand %p710_p12, %p595_p6 }
 0x1bf   : > { %p378_p0 = pneg %p377_p13 }
 0x1c1   : > { %523 = dma.done.wait (%p378_p0), %s269_s4, 256  }
 0x1c2   : > { %525 = vsyncadd (%p378_p0), %s269_s4, 4294967040  ;;  %p16_p5 = scmp.ge.s32.totalorder %s611_s21, 4   ;;  %s711_s9 = smov %s532_s10 }
 0x1c3   : > { %s712_s10 = smov %s536_s11  ;;  %s713_s11 = smov %s621_s25 }
 0x1c4   : > { %s714_s12 = smov %s611_s21  ;;  %18 = sbr.rel (!%p16_p5) target bundleno = 6 (0x6), region = 78 }
 0x1c9   :  { %275 = vsyncpa [#allocation3], 1 }
 0x1ca   :  { %277 = vsyncpa [#allocation3 + $0x1], 1 }
 0x1cb   :  { %278 = vsyncpa [#allocation4], 1 }
 0x1cc   :  { %280 = vsyncpa [#allocation4 + $0x1], 1 }
 0x1cd   :  { %281 = vsyncpa [#allocation5], 1 }
 0x1ce   :  { %283 = vsyncpa [#allocation5 + $0x1], 1 }

</bundles_post_ra>
